<compile_context>
chip_gen: v7x
topology: tpu7x:2x2x1
jax: 0.10.0
libtpu: 0.0.40
codegen_flags: <defaults>
</compile_context>

<pallas_src>
import jax
import jax.numpy as jnp
from jax.experimental import pallas as pl
from jax.experimental.pallas import tpu as pltpu


def _embedding_kernel(emb_ref, ids_ref, pos_ref, out_ref):
    """One grid step = one (seq-tile s, batch b) block of ts tokens.

    emb_ref : (V, D)  f32 VMEM, resident across all grid steps (index_map -> (0, 0))
    ids_ref : (ts, 1) int32 VMEM, token ids for this (b, seq-tile) block (sublane-major)
    pos_ref : (ts, D) f32 VMEM positional-encoding tile (reused across the batch axis)
    out_ref : (ts, D) f32 VMEM block of the (B, S, D) output (batch dim squeezed)
    """
    emb = emb_ref[...]                       # (V, D), already resident in VMEM
    ids = ids_ref[...]                       # (ts, 1) int32
    acc = pos_ref[...].astype(jnp.float32)   # start from the positional tile

    # In-VMEM gather: vocab is tiny (V = 10), so a static select-sum over the
    # resident table is exact f32 and pure VPU work that hides under the
    # output DMA.  One select-add per vocab row, broadcast along lanes.
    # TODO(synk): for large vocabularies switch to a one-hot MXU matmul (bf16)
    # or a coalesced HBM DMA-gather path instead of this static unroll.
    for v in range(emb.shape[0]):
        acc = acc + jnp.where(ids == v, emb[v:v + 1, :], 0.0)

    out_ref[...] = acc.astype(out_ref.dtype)
    # TODO(synk): training-mode dropout (PRNG mask + 1/(1-p) scaling) not
    # applied; eval()/inference semantics -> identity.


def make_positional_encoding(max_len: int, d_model: int) -> jnp.ndarray:
    """Sinusoid table, identical to PyTorch PositionalEncoding.__init__."""
    assert d_model % 2 == 0, "sinusoid encoding requires even d_model"
    pos = jnp.arange(max_len, dtype=jnp.float32)[:, None]          # (max_len, 1)
    two_i = jnp.arange(0, d_model, 2, dtype=jnp.float32)           # (d_model/2,)
    div = jnp.power(10000.0, two_i / float(d_model))               # (d_model/2,)
    enc = jnp.zeros((max_len, d_model), dtype=jnp.float32)
    enc = enc.at[:, 0::2].set(jnp.sin(pos / div))
    enc = enc.at[:, 1::2].set(jnp.cos(pos / div))
    return enc


def transformer_embedding(x, emb_table, pos_encoding, *, seq_tile=512):
    """Forward pass of TransformerEmbedding (eval mode).

    x:            (B, S) int32 token ids
    emb_table:    (V, D) float32 (row padding_idx=1 is zero)
    pos_encoding: (max_len, D) float32
    returns:      (B, S, D) float32
    """
    B, S = x.shape
    V, D = emb_table.shape
    assert pos_encoding.shape[0] >= S, "sequence longer than max_len"
    assert pos_encoding.shape[1] == D

    # Largest seq tile <= seq_tile that divides S (amortizes per-step overhead).
    ts = min(seq_tile, S)
    while S % ts:
        ts -= 1

    itemsize = emb_table.dtype.itemsize
    emb_bytes = V * D * itemsize
    # VMEM-resident table path only (fine for this module's vocab_size=10).
    assert emb_bytes <= 24 * 1024 * 1024, (
        "embedding table too large for the VMEM-resident path")

    pos = pos_encoding[:S, :].astype(emb_table.dtype)      # (S, D), shared across batch
    ids = x.astype(jnp.int32)[..., None]                   # (B, S, 1) -> sublane-major tiles

    # resident table + double-buffered (pos, out, ids) tiles + slack
    tile_bytes = ts * D * itemsize
    vmem_needed = emb_bytes + 2 * (2 * tile_bytes + ts * 4) + (1 << 20)
    vmem_limit = int(min(64 * 1024 * 1024, max(8 * 1024 * 1024, vmem_needed)))

    cost = pl.CostEstimate(
        flops=2 * B * S * V * D,                   # select-sum gather + add
        transcendentals=0,
        bytes_accessed=(B * S * D * itemsize       # output write
                        + V * D * itemsize         # table read (once)
                        + S * D * itemsize         # pos read (once per seq tile)
                        + B * S * 4),              # token ids
    )

    kernel = pl.pallas_call(
        _embedding_kernel,
        out_shape=jax.ShapeDtypeStruct((B, S, D), emb_table.dtype),
        grid_spec=pltpu.PrefetchScalarGridSpec(
            num_scalar_prefetch=0,
            grid=(S // ts, B),                                         # seq outer, batch inner
            in_specs=[
                pl.BlockSpec((V, D), lambda s, b: (0, 0)),             # resident emb table
                pl.BlockSpec((None, ts, 1), lambda s, b: (b, s, 0)),   # ids tile (ts, 1)
                pl.BlockSpec((ts, D), lambda s, b: (s, 0)),            # pos tile, reused over b
            ],
            out_specs=pl.BlockSpec((None, ts, D), lambda s, b: (b, s, 0)),
        ),
        compiler_params=pltpu.CompilerParams(
            dimension_semantics=("parallel", "parallel"),
            vmem_limit_bytes=vmem_limit,
        ),
        cost_estimate=cost,
    )
    return kernel(emb_table, ids, pos)


if __name__ == "__main__":
    # Module config (small, consistent with the PyTorch module: vocab_size=10)
    vocab_size = 10
    d_model = 32
    max_len = 16
    padding_idx = 1
    B, S = 2, 8

    key = jax.random.PRNGKey(0)
    k_emb, k_tok = jax.random.split(key)

    # nn.Embedding init: N(0,1), row padding_idx zeroed.
    emb_table = jax.random.normal(k_emb, (vocab_size, d_model), dtype=jnp.float32)
    emb_table = emb_table.at[padding_idx, :].set(0.0)

    pos_encoding = make_positional_encoding(max_len, d_model)

    x = jax.random.randint(k_tok, (B, S), 0, vocab_size, dtype=jnp.int32)

    out = transformer_embedding(x, emb_table, pos_encoding)
    out = jax.block_until_ready(out)

    # Pure-JAX reference (gather + broadcast add), dropout in eval -> identity.
    ref = jnp.take(emb_table, x, axis=0) + pos_encoding[:S, :][None, :, :]
    assert out.shape == (B, S, d_model)
    assert jnp.allclose(out, ref, atol=1e-6, rtol=1e-6)

    print("KERNEL_OK")
</pallas_src>

<mosaic_0001>
module attributes {stable_mosaic.version = 11 : i64} {
  func.func @_embedding_kernel(%arg0: i32, %arg1: i32, %arg2: memref<10x32xf32, #tpu.memory_space<vmem>>, %arg3: memref<1x8x1xi32, #tpu.memory_space<vmem>>, %arg4: memref<8x32xf32, #tpu.memory_space<vmem>>, %arg5: memref<1x8x32xf32, #tpu.memory_space<vmem>>) attributes {dimension_semantics = [#tpu.dimension_semantics<parallel>, #tpu.dimension_semantics<parallel>], iteration_bounds = array<i64: 1, 2>, scalar_prefetch = 0 : i64, scratch_operands = 0 : i64, tpu.core_type = #tpu.core_type<tc>, window_params = [{pipeline_mode = #tpu.pipeline_mode<synchronous>, transform_indices = @transform_0, window_bounds = array<i64: 10, 32>}, {transform_indices = @transform_1, window_bounds = array<i64: 1, 8, 1>}, {transform_indices = @transform_2, window_bounds = array<i64: 8, 32>}, {transform_indices = @transform_3, window_bounds = array<i64: 1, 8, 32>}]} {
    %c0 = arith.constant 0 : index
    %c0_0 = arith.constant 0 : index
    %0 = vector.load %arg2[%c0, %c0_0] : memref<10x32xf32, #tpu.memory_space<vmem>>, vector<10x32xf32>
    %c0_1 = arith.constant 0 : index
    %c0_2 = arith.constant 0 : index
    %c0_3 = arith.constant 0 : index
    %1 = vector.load %arg3[%c0_1, %c0_2, %c0_3] : memref<1x8x1xi32, #tpu.memory_space<vmem>>, vector<1x8x1xi32>
    %2 = vector.shape_cast %1 : vector<1x8x1xi32> to vector<8x1xi32>
    %c0_4 = arith.constant 0 : index
    %c0_5 = arith.constant 0 : index
    %3 = vector.load %arg4[%c0_4, %c0_5] : memref<8x32xf32, #tpu.memory_space<vmem>>, vector<8x32xf32>
    %c0_i32 = arith.constant 0 : i32
    %4 = vector.broadcast %c0_i32 : i32 to vector<8x1xi32>
    %5 = arith.cmpi eq, %2, %4 : vector<8x1xi32>
    %6 = vector.extract_strided_slice %0 {offsets = [0, 0], sizes = [1, 32], strides = [1, 1]} : vector<10x32xf32> to vector<1x32xf32>
    %cst = arith.constant 0.000000e+00 : f32
    %7 = vector.shape_cast %5 : vector<8x1xi1> to vector<8x1xi1>
    %8 = vector.broadcast %7 : vector<8x1xi1> to vector<8x32xi1>
    %9 = vector.shape_cast %6 : vector<1x32xf32> to vector<1x32xf32>
    %10 = vector.broadcast %9 : vector<1x32xf32> to vector<8x32xf32>
    %11 = vector.broadcast %cst : f32 to vector<8x32xf32>
    %12 = arith.select %8, %10, %11 : vector<8x32xi1>, vector<8x32xf32>
    %13 = arith.addf %3, %12 : vector<8x32xf32>
    %c1_i32 = arith.constant 1 : i32
    %14 = vector.broadcast %c1_i32 : i32 to vector<8x1xi32>
    %15 = arith.cmpi eq, %2, %14 : vector<8x1xi32>
    %16 = vector.extract_strided_slice %0 {offsets = [1, 0], sizes = [1, 32], strides = [1, 1]} : vector<10x32xf32> to vector<1x32xf32>
    %cst_6 = arith.constant 0.000000e+00 : f32
    %17 = vector.shape_cast %15 : vector<8x1xi1> to vector<8x1xi1>
    %18 = vector.broadcast %17 : vector<8x1xi1> to vector<8x32xi1>
    %19 = vector.shape_cast %16 : vector<1x32xf32> to vector<1x32xf32>
    %20 = vector.broadcast %19 : vector<1x32xf32> to vector<8x32xf32>
    %21 = vector.broadcast %cst_6 : f32 to vector<8x32xf32>
    %22 = arith.select %18, %20, %21 : vector<8x32xi1>, vector<8x32xf32>
    %23 = arith.addf %13, %22 : vector<8x32xf32>
    %c2_i32 = arith.constant 2 : i32
    %24 = vector.broadcast %c2_i32 : i32 to vector<8x1xi32>
    %25 = arith.cmpi eq, %2, %24 : vector<8x1xi32>
    %26 = vector.extract_strided_slice %0 {offsets = [2, 0], sizes = [1, 32], strides = [1, 1]} : vector<10x32xf32> to vector<1x32xf32>
    %cst_7 = arith.constant 0.000000e+00 : f32
    %27 = vector.shape_cast %25 : vector<8x1xi1> to vector<8x1xi1>
    %28 = vector.broadcast %27 : vector<8x1xi1> to vector<8x32xi1>
    %29 = vector.shape_cast %26 : vector<1x32xf32> to vector<1x32xf32>
    %30 = vector.broadcast %29 : vector<1x32xf32> to vector<8x32xf32>
    %31 = vector.broadcast %cst_7 : f32 to vector<8x32xf32>
    %32 = arith.select %28, %30, %31 : vector<8x32xi1>, vector<8x32xf32>
    %33 = arith.addf %23, %32 : vector<8x32xf32>
    %c3_i32 = arith.constant 3 : i32
    %34 = vector.broadcast %c3_i32 : i32 to vector<8x1xi32>
    %35 = arith.cmpi eq, %2, %34 : vector<8x1xi32>
    %36 = vector.extract_strided_slice %0 {offsets = [3, 0], sizes = [1, 32], strides = [1, 1]} : vector<10x32xf32> to vector<1x32xf32>
    %cst_8 = arith.constant 0.000000e+00 : f32
    %37 = vector.shape_cast %35 : vector<8x1xi1> to vector<8x1xi1>
    %38 = vector.broadcast %37 : vector<8x1xi1> to vector<8x32xi1>
    %39 = vector.shape_cast %36 : vector<1x32xf32> to vector<1x32xf32>
    %40 = vector.broadcast %39 : vector<1x32xf32> to vector<8x32xf32>
    %41 = vector.broadcast %cst_8 : f32 to vector<8x32xf32>
    %42 = arith.select %38, %40, %41 : vector<8x32xi1>, vector<8x32xf32>
    %43 = arith.addf %33, %42 : vector<8x32xf32>
    %c4_i32 = arith.constant 4 : i32
    %44 = vector.broadcast %c4_i32 : i32 to vector<8x1xi32>
    %45 = arith.cmpi eq, %2, %44 : vector<8x1xi32>
    %46 = vector.extract_strided_slice %0 {offsets = [4, 0], sizes = [1, 32], strides = [1, 1]} : vector<10x32xf32> to vector<1x32xf32>
    %cst_9 = arith.constant 0.000000e+00 : f32
    %47 = vector.shape_cast %45 : vector<8x1xi1> to vector<8x1xi1>
    %48 = vector.broadcast %47 : vector<8x1xi1> to vector<8x32xi1>
    %49 = vector.shape_cast %46 : vector<1x32xf32> to vector<1x32xf32>
    %50 = vector.broadcast %49 : vector<1x32xf32> to vector<8x32xf32>
    %51 = vector.broadcast %cst_9 : f32 to vector<8x32xf32>
    %52 = arith.select %48, %50, %51 : vector<8x32xi1>, vector<8x32xf32>
    %53 = arith.addf %43, %52 : vector<8x32xf32>
    %c5_i32 = arith.constant 5 : i32
    %54 = vector.broadcast %c5_i32 : i32 to vector<8x1xi32>
    %55 = arith.cmpi eq, %2, %54 : vector<8x1xi32>
    %56 = vector.extract_strided_slice %0 {offsets = [5, 0], sizes = [1, 32], strides = [1, 1]} : vector<10x32xf32> to vector<1x32xf32>
    %cst_10 = arith.constant 0.000000e+00 : f32
    %57 = vector.shape_cast %55 : vector<8x1xi1> to vector<8x1xi1>
    %58 = vector.broadcast %57 : vector<8x1xi1> to vector<8x32xi1>
    %59 = vector.shape_cast %56 : vector<1x32xf32> to vector<1x32xf32>
    %60 = vector.broadcast %59 : vector<1x32xf32> to vector<8x32xf32>
    %61 = vector.broadcast %cst_10 : f32 to vector<8x32xf32>
    %62 = arith.select %58, %60, %61 : vector<8x32xi1>, vector<8x32xf32>
    %63 = arith.addf %53, %62 : vector<8x32xf32>
    %c6_i32 = arith.constant 6 : i32
    %64 = vector.broadcast %c6_i32 : i32 to vector<8x1xi32>
    %65 = arith.cmpi eq, %2, %64 : vector<8x1xi32>
    %66 = vector.extract_strided_slice %0 {offsets = [6, 0], sizes = [1, 32], strides = [1, 1]} : vector<10x32xf32> to vector<1x32xf32>
    %cst_11 = arith.constant 0.000000e+00 : f32
    %67 = vector.shape_cast %65 : vector<8x1xi1> to vector<8x1xi1>
    %68 = vector.broadcast %67 : vector<8x1xi1> to vector<8x32xi1>
    %69 = vector.shape_cast %66 : vector<1x32xf32> to vector<1x32xf32>
    %70 = vector.broadcast %69 : vector<1x32xf32> to vector<8x32xf32>
    %71 = vector.broadcast %cst_11 : f32 to vector<8x32xf32>
    %72 = arith.select %68, %70, %71 : vector<8x32xi1>, vector<8x32xf32>
    %73 = arith.addf %63, %72 : vector<8x32xf32>
    %c7_i32 = arith.constant 7 : i32
    %74 = vector.broadcast %c7_i32 : i32 to vector<8x1xi32>
    %75 = arith.cmpi eq, %2, %74 : vector<8x1xi32>
    %76 = vector.extract_strided_slice %0 {offsets = [7, 0], sizes = [1, 32], strides = [1, 1]} : vector<10x32xf32> to vector<1x32xf32>
    %cst_12 = arith.constant 0.000000e+00 : f32
    %77 = vector.shape_cast %75 : vector<8x1xi1> to vector<8x1xi1>
    %78 = vector.broadcast %77 : vector<8x1xi1> to vector<8x32xi1>
    %79 = vector.shape_cast %76 : vector<1x32xf32> to vector<1x32xf32>
    %80 = vector.broadcast %79 : vector<1x32xf32> to vector<8x32xf32>
    %81 = vector.broadcast %cst_12 : f32 to vector<8x32xf32>
    %82 = arith.select %78, %80, %81 : vector<8x32xi1>, vector<8x32xf32>
    %83 = arith.addf %73, %82 : vector<8x32xf32>
    %c8_i32 = arith.constant 8 : i32
    %84 = vector.broadcast %c8_i32 : i32 to vector<8x1xi32>
    %85 = arith.cmpi eq, %2, %84 : vector<8x1xi32>
    %86 = vector.extract_strided_slice %0 {offsets = [8, 0], sizes = [1, 32], strides = [1, 1]} : vector<10x32xf32> to vector<1x32xf32>
    %cst_13 = arith.constant 0.000000e+00 : f32
    %87 = vector.shape_cast %85 : vector<8x1xi1> to vector<8x1xi1>
    %88 = vector.broadcast %87 : vector<8x1xi1> to vector<8x32xi1>
    %89 = vector.shape_cast %86 : vector<1x32xf32> to vector<1x32xf32>
    %90 = vector.broadcast %89 : vector<1x32xf32> to vector<8x32xf32>
    %91 = vector.broadcast %cst_13 : f32 to vector<8x32xf32>
    %92 = arith.select %88, %90, %91 : vector<8x32xi1>, vector<8x32xf32>
    %93 = arith.addf %83, %92 : vector<8x32xf32>
    %c9_i32 = arith.constant 9 : i32
    %94 = vector.broadcast %c9_i32 : i32 to vector<8x1xi32>
    %95 = arith.cmpi eq, %2, %94 : vector<8x1xi32>
    %96 = vector.extract_strided_slice %0 {offsets = [9, 0], sizes = [1, 32], strides = [1, 1]} : vector<10x32xf32> to vector<1x32xf32>
    %cst_14 = arith.constant 0.000000e+00 : f32
    %97 = vector.shape_cast %95 : vector<8x1xi1> to vector<8x1xi1>
    %98 = vector.broadcast %97 : vector<8x1xi1> to vector<8x32xi1>
    %99 = vector.shape_cast %96 : vector<1x32xf32> to vector<1x32xf32>
    %100 = vector.broadcast %99 : vector<1x32xf32> to vector<8x32xf32>
    %101 = vector.broadcast %cst_14 : f32 to vector<8x32xf32>
    %102 = arith.select %98, %100, %101 : vector<8x32xi1>, vector<8x32xf32>
    %103 = arith.addf %93, %102 : vector<8x32xf32>
    %c0_15 = arith.constant 0 : index
    %c0_16 = arith.constant 0 : index
    %c0_17 = arith.constant 0 : index
    %104 = vector.load %arg5[%c0_15, %c0_16, %c0_17] : memref<1x8x32xf32, #tpu.memory_space<vmem>>, vector<1x8x32xf32>
    %105 = vector.shape_cast %104 : vector<1x8x32xf32> to vector<8x32xf32>
    %106 = vector.shape_cast %103 : vector<8x32xf32> to vector<1x8x32xf32>
    tpu.vector_store %arg5[%c0_15, %c0_16, %c0_17], %106 {strides = array<i32>} : memref<1x8x32xf32, #tpu.memory_space<vmem>>, vector<1x8x32xf32>,
    return
  }
  func.func @transform_0(%arg0: i32, %arg1: i32) -> (i32, i32) {
    %c0_i32 = arith.constant 0 : i32
    %c0_i32_0 = arith.constant 0 : i32
    %c0_i32_1 = arith.constant 0 : i32
    return %c0_i32, %c0_i32_0 : i32, i32
  }
  func.func @transform_1(%arg0: i32, %arg1: i32) -> (i32, i32, i32) {
    %c0_i32 = arith.constant 0 : i32
    %c0_i32_0 = arith.constant 0 : i32
    return %arg1, %arg0, %c0_i32 : i32, i32, i32
  }
  func.func @transform_2(%arg0: i32, %arg1: i32) -> (i32, i32) {
    %c0_i32 = arith.constant 0 : i32
    %c0_i32_0 = arith.constant 0 : i32
    return %arg0, %c0_i32 : i32, i32
  }
  func.func @transform_3(%arg0: i32, %arg1: i32) -> (i32, i32, i32) {
    %c0_i32 = arith.constant 0 : i32
    %c0_i32_0 = arith.constant 0 : i32
    return %arg1, %arg0, %c0_i32 : i32, i32, i32
  }
}

</mosaic_0001>

<bundles_post_ra>
// kernel: tpu_custom_call.1
= control target key start
LH: loop header
LB: loop body
LE: loop exit
PB: predicated region body
PF: predicated region fallthrough
CT: control target
= control target key end

     0   :  { %8 = vsyncpa [#allocation3], 0  ;;  %s732_s0 = inlined_call_operand.vmem [shape: f32[10,32], index: 0, kind: input, shape index: {}]   ;;  %s733_s1 = inlined_call_operand.vmem [shape: s32[2,8,1], index: 1, kind: input, shape index: {}]   ;;  %s734_s2 = inlined_call_operand.vmem [shape: f32[8,32], index: 2, kind: input, shape index: {}]   ;;  %s735_s3 = inlined_call_operand.hbm [shape: f32[2,8,32], index: 3, kind: output, shape index: {}]  }
   0x1   :  { %10 = vsyncpa [#allocation3 + $0x1], 0  ;;  %s607_s12 = smov 0   ;;  %s609_s13 = smov 0  }
   0x2   :  { %s611_s14 = smov 0   ;;  %s613_s15 = smov 0  }
   0x3   :  { %s615_s16 = smov 0   ;;  %s617_s17 = smov 0  }
   0x4 LB: > { %s435_s18 = sadd.s32 4294967295, %s583_s17   ;;  %s436_s19 = sadd.s32 4294967294, %s583_s17   ;;  %s583_s17 = sphi %s617_s17, %s16_s17   ;;  %s579_s16 = sphi %s615_s16, %s742_s16   ;;  %s575_s15 = sphi %s613_s15, %s741_s15   ;;  %s571_s14 = sphi %s611_s14, %s740_s14   ;;  %s567_s13 = sphi %s609_s13, %s739_s13   ;;  %s563_s12 = sphi %s607_s12, %s738_s12  }
   0x5   : > { %s25_s20 = sadd.s32 1, %s579_s16  ;;  %s112_s21 = sadd.s32 1, %s571_s14 }
   0x6   : > { %p26_p0 = scmp.ge.s32.totalorder %s25_s20, 2  ;;  %p122_p1 = scmp.ne.s32.totalorder %s571_s14, %s567_s13 }
   0x7   : > { %p123_p2 = scmp.eq.s32.totalorder %s435_s18, 1  ;;  %p128_p3 = scmp.ne.s32.totalorder %s567_s13, %s563_s12 }
   0x8   : > { %s744_s20 = smov (%p26_p0, %s25_s20), 0  ;;  %p129_p5 = scmp.eq.s32.totalorder %s436_s19, 1 }
   0x9   : > { %p647_p4 = por %p123_p2, %p122_p1  ;;  %s107_s23 = ssub.s32 %s579_s16, %s744_s20 }
   0xa   : > { %p440_p6 = scmp.ge.s32.totalorder %s583_s17, 1  ;;  %p110_p7 = scmp.eq.s32.totalorder %s107_s23, 0 }
   0xb   : > { %p654_p8 = por %p129_p5, %p128_p3  ;;  %p167_p9 = scmp.lt.s32.totalorder %s583_s17, 3 }
   0xc   : > { %s660_s25 = scalar_select %p110_p7, %s571_s14, %s112_s21  }
   0xd   : > { %p168_p10 = pnand %p440_p6, %p167_p9 }
   0xe   : > { %p197_p11 = scmp.lt.s32.totalorder (!%p168_p10), %s575_s15, 1  ;;  %v585_v0 = vmov (!%p168_p10), 0   ;;  %v218_v12 = vlaneseq (!%p168_p10)  ;;  %v208_v15 = vld [vmem:[%s732_s0] sm:$0xff] (!%p168_p10)  ;;  %s194_s8 = sand.u32 (!%p168_p10), 1, %s567_s13   ;;  %v209_v49 = vld [vmem:[%s732_s0 + $0x8] sm:$0x3] (!%p168_p10) }
   0xf   : > { %171 = sbr.rel (%p168_p10) target bundleno = 195 (0xc3), region = 32  ;;  %504 = vset.pattern.permute.xlu1 (!%p168_p10), %v585_v0  ;;  %503 = vset.pattern.permute.xlu0 (!%p168_p10), %v585_v0  ;;  %v211_v21 = vld [vmem:[%s734_s2] sm:$0xff] (!%p168_p10)  ;;  %s441_s11 = sshll.u32 (!%p168_p10), %s194_s8, 3 }
  0x10   : > { %v219_v13 = vshrl.u32 (!%p168_p10), %v218_v12, 7  ;;  %s444_s18 = sshll.u32 (!%p168_p10), %s575_s15, 7  ;;  %s196_s19 = scalar_lea.vmem (!%p168_p10), [#allocation2], %s441_s11 }
  0x11   : > { %s349_s21 = sshll.u32 (!%p168_p10), %s196_s19, 4  ;;  %s335_s28 = scalar_lea.sflag (!%p168_p10), [#allocation3], %s194_s8  ;;  %s685_s21 = int_to_ptr.vmem [resolvable:$true] %s349_s21 }
  0x12   : > { %v220_v14 = vsub.s32 (!%p168_p10), 0, %v219_v13  ;;  %v232_v17 = vsub.s32 (!%p168_p10), 1, %v219_v13  ;;  %v244_v18 = vsub.s32 (!%p168_p10), 2, %v219_v13  ;;  %v256_v23 = vsub.s32 (!%p168_p10), 3, %v219_v13  ;;  %s586_s29 = smov (!%p168_p10), [#allocation2]  }
  0x13   : > { %v268_v28 = vsub.s32 (!%p168_p10), 4, %v219_v13  ;;  %v280_v32 = vsub.s32 (!%p168_p10), 5, %v219_v13  ;;  %v292_v38 = vsub.s32 (!%p168_p10), 6, %v219_v13  ;;  %v304_v42 = vsub.s32 (!%p168_p10), 7, %v219_v13 }
  0x14   : > { %v221_v16 = vrot.slane (!%p168_p10), %v208_v15, %v220_v14  ;;  %v233_v24 = vrot.slane (!%p168_p10), %v208_v15, %v232_v17  ;;  %v245_v25 = vrot.slane (!%p168_p10), %v208_v15, %v244_v18  ;;  %v257_v30 = vrot.slane (!%p168_p10), %v208_v15, %v256_v23 }
  0x15   : > { %v269_v36 = vrot.slane (!%p168_p10), %v208_v15, %v268_v28  ;;  %v281_v41 = vrot.slane (!%p168_p10), %v208_v15, %v280_v32  ;;  %v293_v46 = vrot.slane (!%p168_p10), %v208_v15, %v292_v38  ;;  %v305_v51 = vrot.slane (!%p168_p10), %v208_v15, %v304_v42 }
  0x16   : > { %s198_s26 = scalar_select %p197_p11, %s575_s15, 1  ;;  %v317_v55 = vrot.slane %v209_v49, %v220_v14  ;;  %v329_v59 = vrot.slane %v209_v49, %v232_v17 }
  0x17   : > { %s505_s15 = scalar_lea.vmem %s685_s21, 128 }
  0x18   : > { %s442_s27 = sshll.u32 %s198_s26, 3  ;;  %p506_p12 = scmp.ne.s32.totalorder %s685_s21, %s505_s15 }
  0x19   : > { %s203_s30 = scalar_lea.vmem %s733_s1, %s442_s27  ;;  %s683_s27 = scalar_lea.hbm %s735_s3, %s444_s18 }
  0x1a   : > { %v210_v1 = vld [vmem:[%s203_s30] sm:$0xff]  ;;  %p507_p13 = pnand %p506_p12, %p647_p4  ;;  %s509_s30 = sshll.u32 %s586_s29, 4  ;;  %s510_s30 = int_to_ptr.vmem [resolvable:$false] %s509_s30 }
  0x1b   : > { %vm236_vm0 = vcmp.eq.s32.totalorder %v210_v1, 2  ;;  %vm212_vm1 = vcmp.eq.s32.totalorder %v210_v1, 0  ;;  %vm248_vm2 = vcmp.eq.s32.totalorder %v210_v1, 3  ;;  %vm224_vm3 = vcmp.eq.s32.totalorder %v210_v1, 1  ;;  %s511_s4 = scalar_lea.vmem %s510_s30, 256  ;;  %p512_p1 = scmp.lt.s32.totalorder %s685_s21, %s510_s30 }
  0x1c   : > { %v237_v2 = vsel %vm236_vm0, 1, %v585_v0  ;;  %v213_v3 = vsel %vm212_vm1, 1, %v585_v0  ;;  %v249_v4 = vsel %vm248_vm2, 1, %v585_v0  ;;  %v225_v5 = vsel %vm224_vm3, 1, %v585_v0  ;;  %p508_p0 = pneg %p507_p13  ;;  %p513_p2 = scmp.lt.s32.totalorder %s511_s4, %s505_s15 }
  0x1d   : > { %239 = vperm.xlu1 %504, %v237_v2   ;;  %215 = vperm.xlu0 %503, %v213_v3   ;;  %vm272_vm4 = vcmp.eq.s32.totalorder %v210_v1, 5  ;;  %vm260_vm5 = vcmp.eq.s32.totalorder %v210_v1, 4  ;;  %vm296_vm6 = vcmp.eq.s32.totalorder %v210_v1, 7  ;;  %vm284_vm7 = vcmp.eq.s32.totalorder %v210_v1, 6 }
  0x1e   : > { %v273_v6 = vsel %vm272_vm4, 1, %v585_v0  ;;  %v261_v7 = vsel %vm260_vm5, 1, %v585_v0  ;;  %v297_v8 = vsel %vm296_vm6, 1, %v585_v0  ;;  %v285_v9 = vsel %vm284_vm7, 1, %v585_v0  ;;  %p514_p3 = por %p513_p2, %p512_p1 }
  0x1f   : > { %vm320_vm8 = vcmp.eq.s32.totalorder %v210_v1, 9  ;;  %vm308_vm9 = vcmp.eq.s32.totalorder %v210_v1, 8  ;;  %vm332_vm4 = vcmask 261120  }
  0x20   : > { %v321_v10 = vsel %vm320_vm8, 1, %v585_v0  ;;  %v309_v11 = vsel %vm308_vm9, 1, %v585_v0  ;;  %p515_p5 = pnand %p514_p3, %p508_p0 }
  0x21   : > { %251 = vperm.xlu1 %504, %v249_v4   ;;  %227 = vperm.xlu0 %503, %v225_v5  }
  0x25   : > { %275 = vperm.xlu1 %504, %v273_v6   ;;  %263 = vperm.xlu0 %503, %v261_v7  }
  0x29   : > { %299 = vperm.xlu1 %504, %v297_v8   ;;  %287 = vperm.xlu0 %503, %v285_v9  }
  0x2d   : > { %323 = vperm.xlu1 %504, %v321_v10   ;;  %311 = vperm.xlu0 %503, %v309_v11  }
  0x9c   : > { %v240_v19 = vpop.permute.xlu1 %239  ;;  %v216_v20 = vpop.permute.xlu0 %215 }
  0x9d   : > { %vm217_vm10 = vcmp.eq.s32.totalorder %v216_v20, 1  ;;  %vm241_vm11 = vcmp.eq.s32.totalorder %v240_v19, 1 }
  0x9e   : > { %v222_v22 = vsel %vm217_vm10, %v221_v16, 0.0  ;;  %v246_v34 = vsel %vm241_vm11, %v245_v25, 0.0 }
  0x9f   : > { %v223_v29 = vadd.f32 %v222_v22, %v211_v21 }
  0xa0   : > { %v252_v26 = vpop.permute.xlu1 %251  ;;  %v228_v27 = vpop.permute.xlu0 %227 }
  0xa1   : > { %vm229_vm12 = vcmp.eq.s32.totalorder %v228_v27, 1  ;;  %vm253_vm13 = vcmp.eq.s32.totalorder %v252_v26, 1 }
  0xa2   : > { %v234_v31 = vsel %vm229_vm12, %v233_v24, 0.0  ;;  %v258_v40 = vsel %vm253_vm13, %v257_v30, 0.0 }
  0xa3   : > { %v235_v33 = vadd.f32 %v234_v31, %v223_v29 }
  0xa4   : > { %v276_v35 = vpop.permute.xlu1 %275  ;;  %v264_v37 = vpop.permute.xlu0 %263 }
  0xa5   : > { %v247_v39 = vadd.f32 %v246_v34, %v235_v33  ;;  %vm265_vm14 = vcmp.eq.s32.totalorder %v264_v37, 1  ;;  %vm277_vm15 = vcmp.eq.s32.totalorder %v276_v35, 1 }
  0xa6   : > { %v270_v44 = vsel %vm265_vm14, %v269_v36, 0.0  ;;  %v282_v50 = vsel %vm277_vm15, %v281_v41, 0.0 }
  0xa7   : > { %v259_v43 = vadd.f32 %v258_v40, %v247_v39 }
  0xa8   : > { %v300_v45 = vpop.permute.xlu1 %299  ;;  %v288_v47 = vpop.permute.xlu0 %287 }
  0xa9   : > { %v271_v48 = vadd.f32 %v270_v44, %v259_v43  ;;  %vm289_vm0 = vcmp.eq.s32.totalorder %v288_v47, 1  ;;  %vm301_vm1 = vcmp.eq.s32.totalorder %v300_v45, 1 }
  0xaa   : > { %v294_v53 = vsel %vm289_vm0, %v293_v46, 0.0  ;;  %v306_v58 = vsel %vm301_vm1, %v305_v51, 0.0 }
  0xab   : > { %v283_v52 = vadd.f32 %v282_v50, %v271_v48 }
  0xac   : > { %v324_v54 = vpop.permute.xlu1 %323  ;;  %v312_v56 = vpop.permute.xlu0 %311 }
  0xad   : > { %v295_v57 = vadd.f32 %v294_v53, %v283_v52  ;;  %vm313_vm2 = vcmp.eq.s32.totalorder %v312_v56, 1  ;;  %vm325_vm3 = vcmp.eq.s32.totalorder %v324_v54, 1 }
  0xae   : > { %v318_v61 = vsel %vm313_vm2, %v317_v55, 0.0  ;;  %v330_v63 = vsel %vm325_vm3, %v329_v59, 0.0 }
  0xaf   : > { %v307_v60 = vadd.f32 %v306_v58, %v295_v57 }
  0xb1   : > { %v319_v62 = vadd.f32 %v318_v61, %v307_v60 }
  0xb3   : > { %v331_v0 = vadd.f32 %v330_v63, %v319_v62 }
  0xb5   : > { %333 = vst.msk [vmem:[%s196_s19] sm:$0xff] %vm332_vm4, %v331_v0 }
  0xb6   : > { %518 = shalt.err (!%p515_p5)
}
  0xb7   : > { %s519_s5 = scalar_lea.hbm %s683_s27, 128  ;;  %s523_s8 = scalar_lea.hbm %s735_s3, 256 }
  0xb8   : > { %p520_p6 = scmp.ne.s32.totalorder %s683_s27, %s519_s5  ;;  %p524_p10 = scmp.lt.u32.totalorder %s683_s27, %s735_s3 }
  0xb9   : > { %p525_p11 = scmp.lt.u32.totalorder %s523_s8, %s519_s5  ;;  %p527_p13 = scmp.lt.u32.totalorder %s519_s5, %s683_s27 }
  0xba   : > { %p521_p7 = pnand %p520_p6, %p647_p4 }
  0xbb   : > { %p526_p12 = por %p525_p11, %p524_p10 }
  0xbc   : > { %p522_p9 = pneg %p521_p7 }
  0xbd   : > { %p528_p0 = por %p527_p13, %p526_p12 }
  0xbf   : > { %p529_p1 = pnand %p528_p0, %p522_p9 }
  0xc1   : > { %532 = shalt.err (!%p529_p1)
}
  0xc2   : > { %447 = dma.vmem_to_hbm [thread:$0]  (%p647_p4), %s685_s21, 128, %s683_s27, %s335_s28  }
  0xc3 PF: > { %p453_p2 = scmp.ge.s32.totalorder %s583_s17, 2  ;;  %s361_s11 = sand.u32 1, %s563_s12  }
  0xc4   : > { %s362_s18 = scalar_lea.sflag [#allocation3], %s361_s11 }
  0xc5   : > { %p450_p3 = pnand %p453_p2, %p654_p8 }
  0xc7   : > { %558 = dma.done.wait (!%p450_p3), %s362_s18, 128  }
  0xc8   : > { %560 = vsyncadd (!%p450_p3), %s362_s18, 4294967168  ;;  %s16_s17 = sadd.s32 1, %s583_s17   ;;  %s738_s12 = smov %s567_s13 }
  0xc9   : > { %p13_p5 = scmp.ge.s32.totalorder %s16_s17, 4   ;;  %s739_s13 = smov %s571_s14 }
  0xca   : > { %s740_s14 = smov %s660_s25  ;;  %s741_s15 = smov %s579_s16 }
  0xcb   : > { %s742_s16 = smov %s744_s20  ;;  %15 = sbr.rel (!%p13_p5) target bundleno = 4 (0x4), region = 70 }
  0xd2   :  { %367 = vsyncpa [#allocation3], 1 }
  0xd3   :  { %369 = vsyncpa [#allocation3 + $0x1], 1 }

</bundles_post_ra>
